<compile_context>
chip_gen: v7x
topology: tpu7x:2x2x1
jax: 0.10.0
libtpu: 0.0.40
codegen_flags: <defaults>
</compile_context>

<pallas_src>
import jax
import jax.numpy as jnp
from jax.experimental import pallas as pl
from jax.experimental.pallas import tpu as pltpu


def sgu_kernel(x_ref, w_ref, bias_ref, gamma_ref, beta_ref, o_ref, gate_scr):
    """One grid step == one block of `bB` batch rows.

    x_ref:     (bB, N, D)    f32   res | gate halves along the last dim
    w_ref:     (N, N)        bf16  seq-mixing weight (Conv1d, kernel size 1)
    bias_ref:  (N, 1)        f32
    gamma_ref: (1, Dh)       f32   LayerNorm affine scale
    beta_ref:  (1, Dh)       f32   LayerNorm affine shift
    o_ref:     (N, bB*Dh)    f32   batch-folded, lane-dense output block
    gate_scr:  (N, bB*Dh)    bf16  batch-folded LayerNormed gate (matmul rhs)
    """
    bB, _n, d = x_ref.shape
    dh = d // 2

    x = x_ref[...]                       # (bB, N, D)
    res = x[:, :, :dh]                   # (bB, N, Dh)
    gate = x[:, :, dh:]                  # (bB, N, Dh)

    # LayerNorm over the feature dim: two-pass (centered) variance in f32,
    # eps matches the torch default (1e-5).
    mean = jnp.mean(gate, axis=-1, keepdims=True)
    cent = gate - mean
    var = jnp.mean(cent * cent, axis=-1, keepdims=True)
    inv = jax.lax.rsqrt(var + 1e-5)                       # (bB, N, 1)
    gate_n = cent * (inv * gamma_ref[...]) + beta_ref[...]  # (bB, N, Dh), f32

    # Fold batch into the lane axis: gate_scr[:, b*Dh:(b+1)*Dh] = gate_n[b] and
    # stage res the same way inside the (VMEM-resident) output block.  These
    # are a handful of cheap in-VMEM column stores (bB is capped small by the
    # wrapper); they replace bB separate narrow MXU matmuls and make both the
    # matmul rhs and the HBM writeback lane-dense.
    for bb in range(bB):
        col = bb * dh
        gate_scr[:, col:col + dh] = gate_n[bb].astype(gate_scr.dtype)
        o_ref[:, col:col + dh] = res[bb].astype(o_ref.dtype)

    # Single seq-mixing matmul on the MXU (bf16 operands, f32 accumulation),
    # then one vectorized epilogue and one wide unmasked store.
    mixed = jnp.dot(w_ref[...], gate_scr[...], preferred_element_type=jnp.float32)
    o_ref[...] = ((mixed + bias_ref[...]) * o_ref[...]).astype(o_ref.dtype)


def _vmem_capacity_bytes():
    try:
        return int(pltpu.get_tpu_info().vmem_capacity_bytes)
    except Exception:
        return 64 * 1024 * 1024          # conservative (v7x per-core VMEM)


def _choose_batch_block(B, N, D, Dh, itemsize, budget, max_unroll=64):
    """Pick bB such that it (a) divides B, (b) keeps the folded output block
    lane-dense (bB*Dh % 128 == 0, or bB == B so the block is the full array),
    (c) fits the VMEM budget including in-kernel temporaries, (d) keeps the
    in-kernel fold loop short, and (e) leaves >= 2 parallel grid steps when
    possible (v7x has two TensorCores)."""

    def step_bytes(b):
        io = 2 * b * N * (D + Dh) * itemsize      # double-buffered x + out blocks
        scr = b * N * Dh * 2                      # bf16 folded-gate scratch
        tmp = b * N * (D + 4 * Dh) * itemsize     # res/gate/cent/gate_n/mixed values
        return io + scr + tmp

    divs = [b for b in range(1, B + 1) if B % b == 0]
    ok = [b for b in divs if (b * Dh) % 128 == 0 or b == B]      # lane-dense out block
    ok = [b for b in ok if b <= max_unroll] or ok                # bound the fold loop
    fit = [b for b in ok if step_bytes(b) <= budget] or [min(ok)]
    split = [b for b in fit if B // b >= 2] or fit               # >= 2 grid steps if possible
    pref = [b for b in split if (b * Dh) % 256 == 0] or split    # v6e/v7x MXU is 256 wide
    return max(pref)


def spatial_gating_unit(x, w, bias, gamma, beta, *, matmul_dtype=jnp.bfloat16):
    """x: (B, N, D). w: (N, N). bias: (N,). gamma/beta: (D//2,).

    Returns (B, N, D//2) = SpatialGatingUnit.forward(x) (causal=False).
    matmul_dtype=jnp.float32 gives a full-precision MXU path if needed.
    """
    B, N, D = x.shape
    Dh = D // 2
    out_dtype = x.dtype
    f32 = jnp.float32

    x32 = x.astype(f32)
    w_m = w.astype(matmul_dtype)                 # cast ONCE in XLA, not per grid step
    bias2 = bias.astype(f32).reshape(N, 1)
    gamma2 = gamma.astype(f32).reshape(1, Dh)
    beta2 = beta.astype(f32).reshape(1, Dh)

    # Generation-aware VMEM limits: ~32 MiB on v7x (64 MiB VMEM), 48 MiB on
    # v5e/v6e (128 MiB VMEM); block budget leaves headroom for W + scratch.
    vmem_cap = _vmem_capacity_bytes()
    vmem_limit = int(min(48 * 1024 * 1024, vmem_cap // 2))
    block_budget = (vmem_limit * 3) // 5

    itemsize = 4  # f32 compute
    bB = _choose_batch_block(B, N, D, Dh, itemsize, block_budget)
    grid = (B // bB,)
    # TODO(synk): with B=2 and Dh<128 the lane-dense-output tiling rule forces
    # a single grid step (one TensorCore); larger B/Dh automatically split.

    cost = pl.CostEstimate(
        flops=2 * B * N * N * Dh + 10 * B * N * Dh,
        transcendentals=B * N,                                   # rsqrt per (b, row)
        bytes_accessed=(B * N * D + B * N * Dh) * 4
        + N * N * jnp.dtype(matmul_dtype).itemsize
        + (N + 2 * Dh) * 4,
    )

    def build(single_buffer_invariants):
        inv_kw = (
            dict(pipeline_mode=pl.Buffered(1)) if single_buffer_invariants else {}
        )
        return pl.pallas_call(
            sgu_kernel,
            out_shape=jax.ShapeDtypeStruct((N, B * Dh), f32),
            grid_spec=pltpu.PrefetchScalarGridSpec(
                num_scalar_prefetch=0,
                grid=grid,
                in_specs=[
                    pl.BlockSpec((bB, N, D), lambda b: (b, 0, 0)),          # x
                    pl.BlockSpec((N, N), lambda b: (0, 0), **inv_kw),       # W (bf16)
                    pl.BlockSpec((N, 1), lambda b: (0, 0), **inv_kw),       # bias
                    pl.BlockSpec((1, Dh), lambda b: (0, 0), **inv_kw),      # gamma
                    pl.BlockSpec((1, Dh), lambda b: (0, 0), **inv_kw),      # beta
                ],
                out_specs=pl.BlockSpec((N, bB * Dh), lambda b: (0, b)),     # folded out
                scratch_shapes=[pltpu.VMEM((N, bB * Dh), matmul_dtype)],
            ),
            compiler_params=pltpu.CompilerParams(
                dimension_semantics=("parallel",),
                vmem_limit_bytes=vmem_limit,
            ),
            cost_estimate=cost,
        )

    try:
        out2d = build(True)(x32, w_m, bias2, gamma2, beta2)
    except Exception:
        # pl.Buffered(1) single-buffering of the grid-invariant operands is an
        # optimization only; fall back to default buffering if it is rejected.
        out2d = build(False)(x32, w_m, bias2, gamma2, beta2)

    # Un-fold the lane-dense (N, B*Dh) kernel output back to (B, N, Dh)
    # outside the kernel (layout plumbing handled by XLA).
    return jnp.transpose(out2d.reshape(N, B, Dh), (1, 0, 2)).astype(out_dtype)


def reference(x, w, bias, gamma, beta):
    B, N, D = x.shape
    Dh = D // 2
    res, gate = x[:, :, :Dh], x[:, :, Dh:]
    mean = jnp.mean(gate, axis=-1, keepdims=True)
    var = jnp.mean((gate - mean) ** 2, axis=-1, keepdims=True)
    gate_n = (gate - mean) / jnp.sqrt(var + 1e-5) * gamma + beta
    mixed = jnp.einsum("ij,bjd->bid", w, gate_n) + bias[None, :, None]
    return mixed * res


if __name__ == "__main__":
    # Small shapes consistent with the module:
    #   dim (feature) = 32 -> dim_out = 16, dim_seq (seq length) = 8, batch = 2
    B, N, D = 2, 8, 32
    Dh = D // 2

    key = jax.random.PRNGKey(0)
    kx, kw = jax.random.split(key)
    x = jax.random.normal(kx, (B, N, D), dtype=jnp.float32)

    # Deterministic parameter init mirroring __init__:
    #   proj.weight ~ U(-init_eps, init_eps) with init_eps = 0.001 / dim_seq
    #   proj.bias = 1.0; LayerNorm gamma = 1, beta = 0
    init_eps = 0.001 / N
    w = jax.random.uniform(kw, (N, N), minval=-init_eps, maxval=init_eps,
                           dtype=jnp.float32)
    bias = jnp.ones((N,), dtype=jnp.float32)
    gamma = jnp.ones((Dh,), dtype=jnp.float32)
    beta = jnp.zeros((Dh,), dtype=jnp.float32)

    out = jax.block_until_ready(spatial_gating_unit(x, w, bias, gamma, beta))
    ref = reference(x, w, bias, gamma, beta)

    assert out.shape == (B, N, Dh)
    # Tolerance covers the intentional bf16 cast of the MXU matmul operands
    # (LayerNorm statistics and accumulation stay in f32).
    assert jnp.allclose(out, ref, atol=1e-4, rtol=1e-4), \
        float(jnp.max(jnp.abs(out - ref)))

    print("KERNEL_OK")
</pallas_src>

<mosaic_0001>
module attributes {stable_mosaic.version = 11 : i64} {
  func.func @sgu_kernel(%arg0: i32, %arg1: memref<2x8x32xf32, #tpu.memory_space<vmem>>, %arg2: memref<8x8xbf16, #tpu.memory_space<vmem>>, %arg3: memref<8x1xf32, #tpu.memory_space<vmem>>, %arg4: memref<1x16xf32, #tpu.memory_space<vmem>>, %arg5: memref<1x16xf32, #tpu.memory_space<vmem>>, %arg6: memref<8x32xf32, #tpu.memory_space<vmem>>, %arg7: memref<8x32xbf16, #tpu.memory_space<vmem>>) attributes {dimension_semantics = [#tpu.dimension_semantics<parallel>], iteration_bounds = array<i64: 1>, scalar_prefetch = 0 : i64, scratch_operands = 1 : i64, tpu.core_type = #tpu.core_type<tc>, window_params = [{transform_indices = @transform_0, window_bounds = array<i64: 2, 8, 32>}, {pipeline_mode = #tpu.pipeline_mode<synchronous>, transform_indices = @transform_1, window_bounds = array<i64: 8, 8>}, {pipeline_mode = #tpu.pipeline_mode<synchronous>, transform_indices = @transform_2, window_bounds = array<i64: 8, 1>}, {pipeline_mode = #tpu.pipeline_mode<synchronous>, transform_indices = @transform_3, window_bounds = array<i64: 1, 16>}, {pipeline_mode = #tpu.pipeline_mode<synchronous>, transform_indices = @transform_4, window_bounds = array<i64: 1, 16>}, {transform_indices = @transform_5, window_bounds = array<i64: 8, 32>}]} {
    %c0 = arith.constant 0 : index
    %c0_0 = arith.constant 0 : index
    %c0_1 = arith.constant 0 : index
    %0 = vector.load %arg1[%c0, %c0_0, %c0_1] : memref<2x8x32xf32, #tpu.memory_space<vmem>>, vector<2x8x32xf32>
    %1 = vector.extract_strided_slice %0 {offsets = [0, 0, 0], sizes = [2, 8, 16], strides = [1, 1, 1]} : vector<2x8x32xf32> to vector<2x8x16xf32>
    %2 = vector.extract_strided_slice %0 {offsets = [0, 0, 16], sizes = [2, 8, 16], strides = [1, 1, 1]} : vector<2x8x32xf32> to vector<2x8x16xf32>
    %cst = arith.constant dense<0.000000e+00> : vector<2x8xf32>
    %3 = vector.multi_reduction <add>, %2, %cst [2] : vector<2x8x16xf32> to vector<2x8xf32>
    %4 = vector.shape_cast %3 : vector<2x8xf32> to vector<2x8x1xf32>
    %cst_2 = arith.constant 1.600000e+01 : f32
    %5 = vector.broadcast %cst_2 : f32 to vector<2x8x1xf32>
    %6 = arith.divf %4, %5 : vector<2x8x1xf32>
    %7 = vector.broadcast %6 : vector<2x8x1xf32> to vector<2x8x16xf32>
    %8 = arith.subf %2, %7 : vector<2x8x16xf32>
    %9 = arith.mulf %8, %8 : vector<2x8x16xf32>
    %cst_3 = arith.constant dense<0.000000e+00> : vector<2x8xf32>
    %10 = vector.multi_reduction <add>, %9, %cst_3 [2] : vector<2x8x16xf32> to vector<2x8xf32>
    %11 = vector.shape_cast %10 : vector<2x8xf32> to vector<2x8x1xf32>
    %cst_4 = arith.constant 1.600000e+01 : f32
    %12 = vector.broadcast %cst_4 : f32 to vector<2x8x1xf32>
    %13 = arith.divf %11, %12 : vector<2x8x1xf32>
    %cst_5 = arith.constant 9.99999974E-6 : f32
    %14 = vector.broadcast %cst_5 : f32 to vector<2x8x1xf32>
    %15 = arith.addf %13, %14 : vector<2x8x1xf32>
    %16 = math.rsqrt %15 : vector<2x8x1xf32>
    %c0_6 = arith.constant 0 : index
    %c0_7 = arith.constant 0 : index
    %17 = vector.load %arg4[%c0_6, %c0_7] : memref<1x16xf32, #tpu.memory_space<vmem>>, vector<1x16xf32>
    %18 = vector.shape_cast %17 : vector<1x16xf32> to vector<1x1x16xf32>
    %19 = vector.broadcast %16 : vector<2x8x1xf32> to vector<2x8x16xf32>
    %20 = vector.broadcast %18 : vector<1x1x16xf32> to vector<2x8x16xf32>
    %21 = arith.mulf %19, %20 : vector<2x8x16xf32>
    %22 = arith.mulf %8, %21 : vector<2x8x16xf32>
    %c0_8 = arith.constant 0 : index
    %c0_9 = arith.constant 0 : index
    %23 = vector.load %arg5[%c0_8, %c0_9] : memref<1x16xf32, #tpu.memory_space<vmem>>, vector<1x16xf32>
    %24 = vector.shape_cast %23 : vector<1x16xf32> to vector<1x1x16xf32>
    %25 = vector.broadcast %24 : vector<1x1x16xf32> to vector<2x8x16xf32>
    %26 = arith.addf %22, %25 : vector<2x8x16xf32>
    %27 = vector.extract_strided_slice %26 {offsets = [0, 0, 0], sizes = [1, 8, 16], strides = [1, 1, 1]} : vector<2x8x16xf32> to vector<1x8x16xf32>
    %28 = vector.shape_cast %27 : vector<1x8x16xf32> to vector<8x16xf32>
    %29 = arith.truncf %28 : vector<8x16xf32> to vector<8x16xbf16>
    %c0_10 = arith.constant 0 : index
    %c0_11 = arith.constant 0 : index
    %30 = vector.load %arg7[%c0_10, %c0_11] : memref<8x32xbf16, #tpu.memory_space<vmem>>, vector<8x16xbf16>
    tpu.vector_store %arg7[%c0_10, %c0_11], %29 {strides = array<i32>} : memref<8x32xbf16, #tpu.memory_space<vmem>>, vector<8x16xbf16>,
    %31 = vector.extract_strided_slice %1 {offsets = [0, 0, 0], sizes = [1, 8, 16], strides = [1, 1, 1]} : vector<2x8x16xf32> to vector<1x8x16xf32>
    %32 = vector.shape_cast %31 : vector<1x8x16xf32> to vector<8x16xf32>
    %c0_12 = arith.constant 0 : index
    %c0_13 = arith.constant 0 : index
    %33 = vector.load %arg6[%c0_12, %c0_13] : memref<8x32xf32, #tpu.memory_space<vmem>>, vector<8x16xf32>
    tpu.vector_store %arg6[%c0_12, %c0_13], %32 {strides = array<i32>} : memref<8x32xf32, #tpu.memory_space<vmem>>, vector<8x16xf32>,
    %34 = vector.extract_strided_slice %26 {offsets = [1, 0, 0], sizes = [1, 8, 16], strides = [1, 1, 1]} : vector<2x8x16xf32> to vector<1x8x16xf32>
    %35 = vector.shape_cast %34 : vector<1x8x16xf32> to vector<8x16xf32>
    %36 = arith.truncf %35 : vector<8x16xf32> to vector<8x16xbf16>
    %c0_14 = arith.constant 0 : index
    %c16 = arith.constant 16 : index
    %37 = vector.load %arg7[%c0_14, %c16] : memref<8x32xbf16, #tpu.memory_space<vmem>>, vector<8x16xbf16>
    tpu.vector_store %arg7[%c0_14, %c16], %36 {strides = array<i32>} : memref<8x32xbf16, #tpu.memory_space<vmem>>, vector<8x16xbf16>,
    %38 = vector.extract_strided_slice %1 {offsets = [1, 0, 0], sizes = [1, 8, 16], strides = [1, 1, 1]} : vector<2x8x16xf32> to vector<1x8x16xf32>
    %39 = vector.shape_cast %38 : vector<1x8x16xf32> to vector<8x16xf32>
    %c0_15 = arith.constant 0 : index
    %c16_16 = arith.constant 16 : index
    %40 = vector.load %arg6[%c0_15, %c16_16] : memref<8x32xf32, #tpu.memory_space<vmem>>, vector<8x16xf32>
    tpu.vector_store %arg6[%c0_15, %c16_16], %39 {strides = array<i32>} : memref<8x32xf32, #tpu.memory_space<vmem>>, vector<8x16xf32>,
    %c0_17 = arith.constant 0 : index
    %c0_18 = arith.constant 0 : index
    %41 = vector.load %arg2[%c0_17, %c0_18] : memref<8x8xbf16, #tpu.memory_space<vmem>>, vector<8x8xbf16>
    %c0_19 = arith.constant 0 : index
    %c0_20 = arith.constant 0 : index
    %42 = vector.load %arg7[%c0_19, %c0_20] : memref<8x32xbf16, #tpu.memory_space<vmem>>, vector<8x32xbf16>
    %cst_21 = arith.constant dense<0.000000e+00> : vector<8x32xf32>
    %43 = tpu.matmul %41, %42, %cst_21 {dimension_numbers = #tpu.dot_dimension_numbers<[1], [0], [0], [1], [0, 0, 1, 1], [], []>} : vector<8x8xbf16>, vector<8x32xbf16>, vector<8x32xf32> -> vector<8x32xf32>
    %c0_22 = arith.constant 0 : index
    %c0_23 = arith.constant 0 : index
    %44 = vector.load %arg3[%c0_22, %c0_23] : memref<8x1xf32, #tpu.memory_space<vmem>>, vector<8x1xf32>
    %45 = vector.broadcast %44 : vector<8x1xf32> to vector<8x32xf32>
    %46 = arith.addf %43, %45 : vector<8x32xf32>
    %c0_24 = arith.constant 0 : index
    %c0_25 = arith.constant 0 : index
    %47 = vector.load %arg6[%c0_24, %c0_25] : memref<8x32xf32, #tpu.memory_space<vmem>>, vector<8x32xf32>
    %48 = arith.mulf %46, %47 : vector<8x32xf32>
    %c0_26 = arith.constant 0 : index
    %c0_27 = arith.constant 0 : index
    %49 = vector.load %arg6[%c0_26, %c0_27] : memref<8x32xf32, #tpu.memory_space<vmem>>, vector<8x32xf32>
    tpu.vector_store %arg6[%c0_26, %c0_27], %48 {strides = array<i32>} : memref<8x32xf32, #tpu.memory_space<vmem>>, vector<8x32xf32>,
    return
  }
  func.func @transform_0(%arg0: i32) -> (i32, i32, i32) {
    %c0_i32 = arith.constant 0 : i32
    %c0_i32_0 = arith.constant 0 : i32
    %c0_i32_1 = arith.constant 0 : i32
    return %arg0, %c0_i32, %c0_i32_0 : i32, i32, i32
  }
  func.func @transform_1(%arg0: i32) -> (i32, i32) {
    %c0_i32 = arith.constant 0 : i32
    %c0_i32_0 = arith.constant 0 : i32
    %c0_i32_1 = arith.constant 0 : i32
    return %c0_i32, %c0_i32_0 : i32, i32
  }
  func.func @transform_2(%arg0: i32) -> (i32, i32) {
    %c0_i32 = arith.constant 0 : i32
    %c0_i32_0 = arith.constant 0 : i32
    %c0_i32_1 = arith.constant 0 : i32
    return %c0_i32, %c0_i32_0 : i32, i32
  }
  func.func @transform_3(%arg0: i32) -> (i32, i32) {
    %c0_i32 = arith.constant 0 : i32
    %c0_i32_0 = arith.constant 0 : i32
    %c0_i32_1 = arith.constant 0 : i32
    return %c0_i32, %c0_i32_0 : i32, i32
  }
  func.func @transform_4(%arg0: i32) -> (i32, i32) {
    %c0_i32 = arith.constant 0 : i32
    %c0_i32_0 = arith.constant 0 : i32
    %c0_i32_1 = arith.constant 0 : i32
    return %c0_i32, %c0_i32_0 : i32, i32
  }
  func.func @transform_5(%arg0: i32) -> (i32, i32) {
    %c0_i32 = arith.constant 0 : i32
    %c0_i32_0 = arith.constant 0 : i32
    return %c0_i32, %arg0 : i32, i32
  }
}

module attributes {stable_mosaic.version = 11 : i64} {
  func.func @sgu_kernel(%arg0: i32, %arg1: memref<2x8x32xf32, #tpu.memory_space<vmem>>, %arg2: memref<8x8xbf16, #tpu.memory_space<vmem>>, %arg3: memref<8x1xf32, #tpu.memory_space<vmem>>, %arg4: memref<1x16xf32, #tpu.memory_space<vmem>>, %arg5: memref<1x16xf32, #tpu.memory_space<vmem>>, %arg6: memref<8x32xf32, #tpu.memory_space<vmem>>, %arg7: memref<8x32xbf16, #tpu.memory_space<vmem>>) attributes {dimension_semantics = [#tpu.dimension_semantics<parallel>], iteration_bounds = array<i64: 1>, scalar_prefetch = 0 : i64, scratch_operands = 1 : i64, tpu.core_type = #tpu.core_type<tc>, window_params = [{transform_indices = @transform_0, window_bounds = array<i64: 2, 8, 32>}, {pipeline_mode = #tpu.pipeline_mode<synchronous>, transform_indices = @transform_1, window_bounds = array<i64: 8, 8>}, {pipeline_mode = #tpu.pipeline_mode<synchronous>, transform_indices = @transform_2, window_bounds = array<i64: 8, 1>}, {pipeline_mode = #tpu.pipeline_mode<synchronous>, transform_indices = @transform_3, window_bounds = array<i64: 1, 16>}, {pipeline_mode = #tpu.pipeline_mode<synchronous>, transform_indices = @transform_4, window_bounds = array<i64: 1, 16>}, {transform_indices = @transform_5, window_bounds = array<i64: 8, 32>}]} {
    %c0 = arith.constant 0 : index
    %c0_0 = arith.constant 0 : index
    %c0_1 = arith.constant 0 : index
    %0 = vector.load %arg1[%c0, %c0_0, %c0_1] : memref<2x8x32xf32, #tpu.memory_space<vmem>>, vector<2x8x32xf32>
    %1 = vector.extract_strided_slice %0 {offsets = [0, 0, 0], sizes = [2, 8, 16], strides = [1, 1, 1]} : vector<2x8x32xf32> to vector<2x8x16xf32>
    %2 = vector.extract_strided_slice %0 {offsets = [0, 0, 16], sizes = [2, 8, 16], strides = [1, 1, 1]} : vector<2x8x32xf32> to vector<2x8x16xf32>
    %cst = arith.constant dense<0.000000e+00> : vector<2x8xf32>
    %3 = vector.multi_reduction <add>, %2, %cst [2] : vector<2x8x16xf32> to vector<2x8xf32>
    %4 = vector.shape_cast %3 : vector<2x8xf32> to vector<2x8x1xf32>
    %cst_2 = arith.constant 1.600000e+01 : f32
    %5 = vector.broadcast %cst_2 : f32 to vector<2x8x1xf32>
    %6 = arith.divf %4, %5 : vector<2x8x1xf32>
    %7 = vector.broadcast %6 : vector<2x8x1xf32> to vector<2x8x16xf32>
    %8 = arith.subf %2, %7 : vector<2x8x16xf32>
    %9 = arith.mulf %8, %8 : vector<2x8x16xf32>
    %cst_3 = arith.constant dense<0.000000e+00> : vector<2x8xf32>
    %10 = vector.multi_reduction <add>, %9, %cst_3 [2] : vector<2x8x16xf32> to vector<2x8xf32>
    %11 = vector.shape_cast %10 : vector<2x8xf32> to vector<2x8x1xf32>
    %cst_4 = arith.constant 1.600000e+01 : f32
    %12 = vector.broadcast %cst_4 : f32 to vector<2x8x1xf32>
    %13 = arith.divf %11, %12 : vector<2x8x1xf32>
    %cst_5 = arith.constant 9.99999974E-6 : f32
    %14 = vector.broadcast %cst_5 : f32 to vector<2x8x1xf32>
    %15 = arith.addf %13, %14 : vector<2x8x1xf32>
    %16 = math.rsqrt %15 : vector<2x8x1xf32>
    %c0_6 = arith.constant 0 : index
    %c0_7 = arith.constant 0 : index
    %17 = vector.load %arg4[%c0_6, %c0_7] : memref<1x16xf32, #tpu.memory_space<vmem>>, vector<1x16xf32>
    %18 = vector.shape_cast %17 : vector<1x16xf32> to vector<1x1x16xf32>
    %19 = vector.broadcast %16 : vector<2x8x1xf32> to vector<2x8x16xf32>
    %20 = vector.broadcast %18 : vector<1x1x16xf32> to vector<2x8x16xf32>
    %21 = arith.mulf %19, %20 : vector<2x8x16xf32>
    %22 = arith.mulf %8, %21 : vector<2x8x16xf32>
    %c0_8 = arith.constant 0 : index
    %c0_9 = arith.constant 0 : index
    %23 = vector.load %arg5[%c0_8, %c0_9] : memref<1x16xf32, #tpu.memory_space<vmem>>, vector<1x16xf32>
    %24 = vector.shape_cast %23 : vector<1x16xf32> to vector<1x1x16xf32>
    %25 = vector.broadcast %24 : vector<1x1x16xf32> to vector<2x8x16xf32>
    %26 = arith.addf %22, %25 : vector<2x8x16xf32>
    %27 = vector.extract_strided_slice %26 {offsets = [0, 0, 0], sizes = [1, 8, 16], strides = [1, 1, 1]} : vector<2x8x16xf32> to vector<1x8x16xf32>
    %28 = vector.shape_cast %27 : vector<1x8x16xf32> to vector<8x16xf32>
    %29 = arith.truncf %28 : vector<8x16xf32> to vector<8x16xbf16>
    %c0_10 = arith.constant 0 : index
    %c0_11 = arith.constant 0 : index
    %30 = vector.load %arg7[%c0_10, %c0_11] : memref<8x32xbf16, #tpu.memory_space<vmem>>, vector<8x16xbf16>
    tpu.vector_store %arg7[%c0_10, %c0_11], %29 {strides = array<i32>} : memref<8x32xbf16, #tpu.memory_space<vmem>>, vector<8x16xbf16>,
    %31 = vector.extract_strided_slice %1 {offsets = [0, 0, 0], sizes = [1, 8, 16], strides = [1, 1, 1]} : vector<2x8x16xf32> to vector<1x8x16xf32>
    %32 = vector.shape_cast %31 : vector<1x8x16xf32> to vector<8x16xf32>
    %c0_12 = arith.constant 0 : index
    %c0_13 = arith.constant 0 : index
    %33 = vector.load %arg6[%c0_12, %c0_13] : memref<8x32xf32, #tpu.memory_space<vmem>>, vector<8x16xf32>
    tpu.vector_store %arg6[%c0_12, %c0_13], %32 {strides = array<i32>} : memref<8x32xf32, #tpu.memory_space<vmem>>, vector<8x16xf32>,
    %34 = vector.extract_strided_slice %26 {offsets = [1, 0, 0], sizes = [1, 8, 16], strides = [1, 1, 1]} : vector<2x8x16xf32> to vector<1x8x16xf32>
    %35 = vector.shape_cast %34 : vector<1x8x16xf32> to vector<8x16xf32>
    %36 = arith.truncf %35 : vector<8x16xf32> to vector<8x16xbf16>
    %c0_14 = arith.constant 0 : index
    %c16 = arith.constant 16 : index
    %37 = vector.load %arg7[%c0_14, %c16] : memref<8x32xbf16, #tpu.memory_space<vmem>>, vector<8x16xbf16>
    tpu.vector_store %arg7[%c0_14, %c16], %36 {strides = array<i32>} : memref<8x32xbf16, #tpu.memory_space<vmem>>, vector<8x16xbf16>,
    %38 = vector.extract_strided_slice %1 {offsets = [1, 0, 0], sizes = [1, 8, 16], strides = [1, 1, 1]} : vector<2x8x16xf32> to vector<1x8x16xf32>
    %39 = vector.shape_cast %38 : vector<1x8x16xf32> to vector<8x16xf32>
    %c0_15 = arith.constant 0 : index
    %c16_16 = arith.constant 16 : index
    %40 = vector.load %arg6[%c0_15, %c16_16] : memref<8x32xf32, #tpu.memory_space<vmem>>, vector<8x16xf32>
    tpu.vector_store %arg6[%c0_15, %c16_16], %39 {strides = array<i32>} : memref<8x32xf32, #tpu.memory_space<vmem>>, vector<8x16xf32>,
    %c0_17 = arith.constant 0 : index
    %c0_18 = arith.constant 0 : index
    %41 = vector.load %arg2[%c0_17, %c0_18] : memref<8x8xbf16, #tpu.memory_space<vmem>>, vector<8x8xbf16>
    %c0_19 = arith.constant 0 : index
    %c0_20 = arith.constant 0 : index
    %42 = vector.load %arg7[%c0_19, %c0_20] : memref<8x32xbf16, #tpu.memory_space<vmem>>, vector<8x32xbf16>
    %cst_21 = arith.constant dense<0.000000e+00> : vector<8x32xf32>
    %43 = tpu.matmul %41, %42, %cst_21 {dimension_numbers = #tpu.dot_dimension_numbers<[1], [0], [0], [1], [0, 0, 1, 1], [], []>} : vector<8x8xbf16>, vector<8x32xbf16>, vector<8x32xf32> -> vector<8x32xf32>
    %c0_22 = arith.constant 0 : index
    %c0_23 = arith.constant 0 : index
    %44 = vector.load %arg3[%c0_22, %c0_23] : memref<8x1xf32, #tpu.memory_space<vmem>>, vector<8x1xf32>
    %45 = vector.broadcast %44 : vector<8x1xf32> to vector<8x32xf32>
    %46 = arith.addf %43, %45 : vector<8x32xf32>
    %c0_24 = arith.constant 0 : index
    %c0_25 = arith.constant 0 : index
    %47 = vector.load %arg6[%c0_24, %c0_25] : memref<8x32xf32, #tpu.memory_space<vmem>>, vector<8x32xf32>
    %48 = arith.mulf %46, %47 : vector<8x32xf32>
    %c0_26 = arith.constant 0 : index
    %c0_27 = arith.constant 0 : index
    %49 = vector.load %arg6[%c0_26, %c0_27] : memref<8x32xf32, #tpu.memory_space<vmem>>, vector<8x32xf32>
    tpu.vector_store %arg6[%c0_26, %c0_27], %48 {strides = array<i32>} : memref<8x32xf32, #tpu.memory_space<vmem>>, vector<8x32xf32>,
    return
  }
  func.func @transform_0(%arg0: i32) -> (i32, i32, i32) {
    %c0_i32 = arith.constant 0 : i32
    %c0_i32_0 = arith.constant 0 : i32
    %c0_i32_1 = arith.constant 0 : i32
    return %arg0, %c0_i32, %c0_i32_0 : i32, i32, i32
  }
  func.func @transform_1(%arg0: i32) -> (i32, i32) {
    %c0_i32 = arith.constant 0 : i32
    %c0_i32_0 = arith.constant 0 : i32
    %c0_i32_1 = arith.constant 0 : i32
    return %c0_i32, %c0_i32_0 : i32, i32
  }
  func.func @transform_2(%arg0: i32) -> (i32, i32) {
    %c0_i32 = arith.constant 0 : i32
    %c0_i32_0 = arith.constant 0 : i32
    %c0_i32_1 = arith.constant 0 : i32
    return %c0_i32, %c0_i32_0 : i32, i32
  }
  func.func @transform_3(%arg0: i32) -> (i32, i32) {
    %c0_i32 = arith.constant 0 : i32
    %c0_i32_0 = arith.constant 0 : i32
    %c0_i32_1 = arith.constant 0 : i32
    return %c0_i32, %c0_i32_0 : i32, i32
  }
  func.func @transform_4(%arg0: i32) -> (i32, i32) {
    %c0_i32 = arith.constant 0 : i32
    %c0_i32_0 = arith.constant 0 : i32
    %c0_i32_1 = arith.constant 0 : i32
    return %c0_i32, %c0_i32_0 : i32, i32
  }
  func.func @transform_5(%arg0: i32) -> (i32, i32) {
    %c0_i32 = arith.constant 0 : i32
    %c0_i32_0 = arith.constant 0 : i32
    return %c0_i32, %arg0 : i32, i32
  }
}

</mosaic_0001>

<bundles_post_ra>
// kernel: tpu_custom_call.1
= control target key start
LH: loop header
LB: loop body
LE: loop exit
PB: predicated region body
PF: predicated region fallthrough
CT: control target
= control target key end

     0   :  { %10 = vsyncpa [#allocation4], 0  ;;  %s363_s0 = inlined_call_operand.hbm [shape: f32[2,8,32], index: 0, kind: input, shape index: {}]   ;;  %s364_s1 = inlined_call_operand.vmem [shape: bf16[8,8], index: 1, kind: input, shape index: {}]   ;;  %s365_s2 = inlined_call_operand.vmem [shape: f32[8,1], index: 2, kind: input, shape index: {}]   ;;  %s366_s3 = inlined_call_operand.vmem [shape: f32[1,16], index: 3, kind: input, shape index: {}]   ;;  %s367_s4 = inlined_call_operand.vmem [shape: f32[1,16], index: 4, kind: input, shape index: {}]   ;;  %s368_s5 = inlined_call_operand.hbm [shape: f32[8,32], index: 5, kind: output, shape index: {}]  }
   0x1   :  { %11 = vsyncpa [#allocation5], 0  ;;  %s278_s18 = smov [#allocation3]   ;;  %s230_s22 = scalar_lea.hbm %s363_s0, 256 }
   0x2   :  { %s17_s19 = sshll.u32 %s278_s18, 4  ;;  %p231_p0 = scmp.ne.s32.totalorder %s363_s0, %s230_s22  ;;  %s18_s19 = int_to_ptr.vmem [resolvable:$true] %s17_s19 }
   0x3   :  { %p234_p1 = scmp.lt.u32.totalorder %s230_s22, %s363_s0 }
   0x5   :  { %p236_p2 = pnand %p234_p1, %p231_p0 }
   0x7   :  { %239 = shalt.err (!%p236_p2)
}
   0x8   :  { %s240_s27 = scalar_lea.vmem %s18_s19, 256  ;;  %p245_p4 = scmp.lt.s32.totalorder %s18_s19, %s18_s19 }
   0x9   :  { %p241_p3 = scmp.ne.s32.totalorder %s18_s19, %s240_s27  ;;  %p246_p5 = scmp.lt.s32.totalorder %s240_s27, %s240_s27 }
   0xb   :  { %p247_p6 = por %p246_p5, %p245_p4 }
   0xd   :  { %p248_p7 = pnand %p247_p6, %p241_p3 }
   0xf   :  { %251 = shalt.err (!%p248_p7)
}
  0x10   :  { %s279_s28 = smov 128   ;;  %s280_s29 = smov 8  }
  0x11   :  { %23 = dma.hbm_to_vmem [thread:$0]  %s363_s0, 256, %s18_s19, [#allocation4], %s279_s28, %s279_s28, %s280_s29  }
  0x12   :  { %274 = dma.done.wait [#allocation4], 256  }
  0x13   :  { %275 = vsyncadd [#allocation4], 4294967040  ;;  %v36_v0 = vld [vmem:[#allocation3] sm:$0xff]  ;;  %vm46_vm0 = vcmask 130048   ;;  %s281_s7 = smov 112   ;;  %v37_v1 = vld [vmem:[#allocation3 + $0x8] sm:$0xff] }
  0x14   :  { %40 = vrot.lane.b32.xlu0 %v36_v0, %s281_s7  ;;  %119 = vst.msk [vmem:[#allocation6] sm:$0xff] %vm46_vm0, %v36_v0  ;;  %v204_v18 = vld [vmem:[%s367_s4] ss:$0 sm:$0xff]  ;;  %s282_s9 = smov 16   ;;  %v283_v30 = vmov 0.0   ;;  %vm284_vm1 = vmmov 0  }
  0x15   :  { %v203_v25 = vld [vmem:[%s366_s3] ss:$0 sm:$0xff]  ;;  %210 = vmatprep.subr.bf16.mxu0 %v283_v30  ;;  %212 = vmatprep.mubr.msk.bf16.mxu0 %vm284_vm1, %v283_v30  ;;  %vm126_vm2 = vcmask 261248   ;;  %v285_v37 = vmov 0   ;;  %vm117_vm3 = vcmask 125952   ;;  %vm121_vm4 = vcmask 257152  }
  0x16   :  { %225 = vset.pattern.permute.xlu0 %v285_v37  ;;  %v130_v38 = vld [vmem:[%s365_s2] sm:$0xff]  ;;  %vm140_vm5 = vcmask 1043456   ;;  %vm136_vm6 = vcmask 64512   ;;  %s286_s2 = smov [#allocation6]   ;;  %vm186_vm7 = vcmask 261120  }
  0x17   :  { %v128_v46 = vld [vmem:[%s364_s1] sm:$0xf]  ;;  %s194_s14 = sshll.u32 %s286_s2, 4  ;;  %s195_s14 = int_to_ptr.vmem [resolvable:$true] %s194_s14 }
  0x18   :  { %42 = vrot.lane.b32.xlu0 %v37_v1, %s281_s7  ;;  %s252_s15 = scalar_lea.vmem %s195_s14, 128  ;;  %p257_p9 = scmp.lt.s32.totalorder %s195_s14, %s195_s14 }
  0x19   :  { %p253_p8 = scmp.ne.s32.totalorder %s195_s14, %s252_s15  ;;  %p258_p10 = scmp.lt.s32.totalorder %s252_s15, %s252_s15 }
  0x1b   :  { %p259_p11 = por %p258_p10, %p257_p9 }
  0x1d   :  { %p260_p12 = pnand %p259_p11, %p253_p8 }
  0x86   :  { %v41_v2 = vpop.permute.xlu0 %40 }
  0x87   :  { %v47_v3 = vsel %vm46_vm0, %v41_v2, 0.0 }
  0x88   :  { %48 = vadd.xlane.f32.xlu1 %v47_v3 }
  0x8a   :  { %v43_v4 = vpop.permute.xlu0 %42 }
  0x8b   :  { %v50_v5 = vsel %vm46_vm0, %v43_v4, 0.0 }
  0x8c   :  { %51 = vadd.xlane.f32.xlu1 %v50_v5 }
 0x115   :  { %v49_v6 = vpop.xlane.xlu1 %48 }
 0x116   :  { %v54_v7 = vmul.f32 0.0625, %v49_v6 }
 0x118   :  { %v56_v8 = vsub.f32 %v36_v0, %v54_v7 }
 0x119   :  { %v52_v9 = vpop.xlane.xlu1 %51 }
 0x11a   :  { %v55_v10 = vmul.f32 0.0625, %v52_v9  ;;  %v58_v11 = vmul.f32 %v56_v8, %v56_v8 }
 0x11c   :  { %v57_v12 = vsub.f32 %v37_v1, %v55_v10  ;;  %62 = vrot.lane.b32.xlu0 %v58_v11, %s281_s7 }
 0x11e   :  { %v59_v13 = vmul.f32 %v57_v12, %v57_v12 }
 0x120   :  { %64 = vrot.lane.b32.xlu1 %v59_v13, %s281_s7 }
 0x18e   :  { %v63_v14 = vpop.permute.xlu0 %62 }
 0x18f   :  { %v68_v15 = vsel %vm46_vm0, %v63_v14, 0.0 }
 0x190   :  { %69 = vadd.xlane.f32.xlu0 %v68_v15 }
 0x192   :  { %v65_v16 = vpop.permute.xlu1 %64 }
 0x193   :  { %v71_v17 = vsel %vm46_vm0, %v65_v16, 0.0 }
 0x194   :  { %72 = vadd.xlane.f32.xlu1 %v71_v17 }
 0x1a5   :  { %105 = vrot.lane.b32.xlu1 %v204_v18, %s282_s9 }
 0x1a9   :  { %123 = vrot.lane.b32.xlu1 %v37_v1, %s282_s9 }
 0x21d   :  { %v70_v19 = vpop.xlane.xlu0 %69 }
 0x21e   :  { %v74_v20 = vmul.f32 0.0625, %v70_v19 }
 0x220   :  { %v76_v21 = vadd.f32 1e-05, %v74_v20 }
 0x221   :  { %v73_v22 = vpop.xlane.xlu1 %72 }
 0x222   :  { %226 = vrsqrt.f32 %v76_v21  ;;  %v75_v23 = vmul.f32 0.0625, %v73_v22 }
 0x224   :  { %v77_v24 = vadd.f32 1e-05, %v75_v23 }
 0x225   :  { %v106_v32 = vpop.permute.xlu1 %105 }
 0x226   :  { %228 = vrsqrt.f32 %v77_v24 }
 0x229   :  { %v124_v36 = vpop.permute.xlu1 %123 }
 0x22a   :  { %127 = vst.msk [vmem:[#allocation6] sm:$0xff] %vm126_vm2, %v124_v36 }
 0x22c   :  { %v227_v26 = vpop.eup %226 }
 0x22d   :  { %v87_v27 = vmul.f32 %v227_v26, %v203_v25 }
 0x22f   :  { %91 = vrot.lane.b32.xlu0 %v87_v27, %s282_s9 }
 0x230   :  { %v229_v28 = vpop.eup %228 }
 0x231   :  { %v88_v29 = vmul.f32 %v229_v28, %v203_v25  ;;  %v184_v49 = vld [vmem:[#allocation6] sm:$0xff] }
 0x233   :  { %93 = vrot.lane.b32.xlu0 %v88_v29, %s282_s9 }
 0x2a1   :  { %v92_v31 = vpop.permute.xlu0 %91 }
 0x2a2   :  { %v97_v33 = vmul.f32 %v92_v31, %v56_v8 }
 0x2a4   :  { %v108_v34 = vadd.f32 %v106_v32, %v97_v33 }
 0x2a5   :  { %v94_v39 = vpop.permute.xlu0 %93 }
 0x2a6   :  { %v207_v35 = vpack.c.bf16 %v108_v34, %v108_v34  ;;  %v98_v40 = vmul.f32 %v94_v39, %v57_v12 }
 0x2a8   :  { %114 = vrot.lane.b32.xlu0 %v207_v35, %s281_s7  ;;  %v109_v41 = vadd.f32 %v106_v32, %v98_v40 }
 0x2aa   :  { %v120_v42 = vpack.c.bf16 %v109_v41, %v109_v41 }
 0x2ac   :  { %133 = vperm.xlu0 %225, %v130_v38  }
 0x31a   :  { %v115_v43 = vpop.permute.xlu0 %114 }
 0x31b   :  { %118 = vst.msk [vmem:[#allocation2] sm:$0xf] %vm117_vm3, %v115_v43 }
 0x31c   :  { %122 = vst.msk [vmem:[#allocation2] sm:$0xf] %vm121_vm4, %v120_v42 }
 0x323   :  { %v129_v44 = vld [vmem:[#allocation2] sm:$0xf] }
 0x324   :  { %v142_v45 = vsel %vm140_vm5, %v129_v44, 0 }
 0x325   :  { %211 = vmatpush3.bf16.msra.mxu0 %v142_v45 }
 0x328   :  { %213 = vmatmul.mubr.msk.bf16.vlgmr.msra.gmra.mrb[0].mxu0 %vm136_vm6, %v128_v46 }
 0x32b   :  { %v134_v47 = vpop.permute.xlu0 %133 }
 0x3fb   :  { %v178_v48 = vpop.f32.mrb[0].mxu0 }
 0x3fc   :  { %v179_v50 = vadd.f32 %v178_v48, %v134_v47  ;;  %v214_v51 = vpop.f32.mrb[1].mxu0 }
 0x3fd   :  { %v181_v52 = vpop.f32.mrb[2].mxu0 }
 0x3fe   :  { %v185_v53 = vmul.f32 %v184_v49, %v179_v50  ;;  %v215_v54 = vpop.f32.mrb[3].mxu0 }
 0x400   :  { %187 = vst.msk [vmem:[#allocation6] sm:$0xff] %vm186_vm7, %v185_v53 }
 0x401   :  { %263 = shalt.err (!%p260_p12)
}
 0x402   :  { %s264_s17 = scalar_lea.hbm %s368_s5, 128 }
 0x403   :  { %p265_p13 = scmp.ne.s32.totalorder %s368_s5, %s264_s17  ;;  %p268_p0 = scmp.lt.u32.totalorder %s264_s17, %s368_s5 }
 0x405   :  { %p270_p1 = pnand %p268_p0, %p265_p13 }
 0x407   :  { %273 = shalt.err (!%p270_p1)
}
 0x408   :  { %197 = dma.vmem_to_hbm [thread:$0]  %s195_s14, 128, %s368_s5, [#allocation5]  }
 0x409   :  { %276 = dma.done.wait [#allocation5], 128  }
 0x40a   :  { %277 = vsyncadd [#allocation5], 4294967168 }
 0x40b   :  { %201 = vsyncpa [#allocation4], 1 }
 0x40c   :  { %202 = vsyncpa [#allocation5], 1 }

// kernel: tpu_custom_call.1
= control target key start
LH: loop header
LB: loop body
LE: loop exit
PB: predicated region body
PF: predicated region fallthrough
CT: control target
= control target key end

     0   :  { %10 = vsyncpa [#allocation4], 0  ;;  %s363_s0 = inlined_call_operand.hbm [shape: f32[2,8,32], index: 0, kind: input, shape index: {}]   ;;  %s364_s1 = inlined_call_operand.vmem [shape: bf16[8,8], index: 1, kind: input, shape index: {}]   ;;  %s365_s2 = inlined_call_operand.vmem [shape: f32[8,1], index: 2, kind: input, shape index: {}]   ;;  %s366_s3 = inlined_call_operand.vmem [shape: f32[1,16], index: 3, kind: input, shape index: {}]   ;;  %s367_s4 = inlined_call_operand.vmem [shape: f32[1,16], index: 4, kind: input, shape index: {}]   ;;  %s368_s5 = inlined_call_operand.hbm [shape: f32[8,32], index: 5, kind: output, shape index: {}]  }
   0x1   :  { %11 = vsyncpa [#allocation5], 0  ;;  %s278_s18 = smov [#allocation3]   ;;  %s230_s22 = scalar_lea.hbm %s363_s0, 256 }
   0x2   :  { %s17_s19 = sshll.u32 %s278_s18, 4  ;;  %p231_p0 = scmp.ne.s32.totalorder %s363_s0, %s230_s22  ;;  %s18_s19 = int_to_ptr.vmem [resolvable:$true] %s17_s19 }
   0x3   :  { %p234_p1 = scmp.lt.u32.totalorder %s230_s22, %s363_s0 }
   0x5   :  { %p236_p2 = pnand %p234_p1, %p231_p0 }
   0x7   :  { %239 = shalt.err (!%p236_p2)
}
   0x8   :  { %s240_s27 = scalar_lea.vmem %s18_s19, 256  ;;  %p245_p4 = scmp.lt.s32.totalorder %s18_s19, %s18_s19 }
   0x9   :  { %p241_p3 = scmp.ne.s32.totalorder %s18_s19, %s240_s27  ;;  %p246_p5 = scmp.lt.s32.totalorder %s240_s27, %s240_s27 }
   0xb   :  { %p247_p6 = por %p246_p5, %p245_p4 }
   0xd   :  { %p248_p7 = pnand %p247_p6, %p241_p3 }
   0xf   :  { %251 = shalt.err (!%p248_p7)
}
  0x10   :  { %s279_s28 = smov 128   ;;  %s280_s29 = smov 8  }
  0x11   :  { %23 = dma.hbm_to_vmem [thread:$0]  %s363_s0, 256, %s18_s19, [#allocation4], %s279_s28, %s279_s28, %s280_s29  }
  0x12   :  { %274 = dma.done.wait [#allocation4], 256  }
  0x13   :  { %275 = vsyncadd [#allocation4], 4294967040  ;;  %v36_v0 = vld [vmem:[#allocation3] sm:$0xff]  ;;  %vm46_vm0 = vcmask 130048   ;;  %s281_s7 = smov 112   ;;  %v37_v1 = vld [vmem:[#allocation3 + $0x8] sm:$0xff] }
  0x14   :  { %40 = vrot.lane.b32.xlu0 %v36_v0, %s281_s7  ;;  %119 = vst.msk [vmem:[#allocation6] sm:$0xff] %vm46_vm0, %v36_v0  ;;  %v204_v18 = vld [vmem:[%s367_s4] ss:$0 sm:$0xff]  ;;  %s282_s9 = smov 16   ;;  %v283_v30 = vmov 0.0   ;;  %vm284_vm1 = vmmov 0  }
  0x15   :  { %v203_v25 = vld [vmem:[%s366_s3] ss:$0 sm:$0xff]  ;;  %210 = vmatprep.subr.bf16.mxu0 %v283_v30  ;;  %212 = vmatprep.mubr.msk.bf16.mxu0 %vm284_vm1, %v283_v30  ;;  %vm126_vm2 = vcmask 261248   ;;  %v285_v37 = vmov 0   ;;  %vm117_vm3 = vcmask 125952   ;;  %vm121_vm4 = vcmask 257152  }
  0x16   :  { %225 = vset.pattern.permute.xlu0 %v285_v37  ;;  %v130_v38 = vld [vmem:[%s365_s2] sm:$0xff]  ;;  %vm140_vm5 = vcmask 1043456   ;;  %vm136_vm6 = vcmask 64512   ;;  %s286_s2 = smov [#allocation6]   ;;  %vm186_vm7 = vcmask 261120  }
  0x17   :  { %v128_v46 = vld [vmem:[%s364_s1] sm:$0xf]  ;;  %s194_s14 = sshll.u32 %s286_s2, 4  ;;  %s195_s14 = int_to_ptr.vmem [resolvable:$true] %s194_s14 }
  0x18   :  { %42 = vrot.lane.b32.xlu0 %v37_v1, %s281_s7  ;;  %s252_s15 = scalar_lea.vmem %s195_s14, 128  ;;  %p257_p9 = scmp.lt.s32.totalorder %s195_s14, %s195_s14 }
  0x19   :  { %p253_p8 = scmp.ne.s32.totalorder %s195_s14, %s252_s15  ;;  %p258_p10 = scmp.lt.s32.totalorder %s252_s15, %s252_s15 }
  0x1b   :  { %p259_p11 = por %p258_p10, %p257_p9 }
  0x1d   :  { %p260_p12 = pnand %p259_p11, %p253_p8 }
  0x86   :  { %v41_v2 = vpop.permute.xlu0 %40 }
  0x87   :  { %v47_v3 = vsel %vm46_vm0, %v41_v2, 0.0 }
  0x88   :  { %48 = vadd.xlane.f32.xlu1 %v47_v3 }
  0x8a   :  { %v43_v4 = vpop.permute.xlu0 %42 }
  0x8b   :  { %v50_v5 = vsel %vm46_vm0, %v43_v4, 0.0 }
  0x8c   :  { %51 = vadd.xlane.f32.xlu1 %v50_v5 }
 0x115   :  { %v49_v6 = vpop.xlane.xlu1 %48 }
 0x116   :  { %v54_v7 = vmul.f32 0.0625, %v49_v6 }
 0x118   :  { %v56_v8 = vsub.f32 %v36_v0, %v54_v7 }
 0x119   :  { %v52_v9 = vpop.xlane.xlu1 %51 }
 0x11a   :  { %v55_v10 = vmul.f32 0.0625, %v52_v9  ;;  %v58_v11 = vmul.f32 %v56_v8, %v56_v8 }
 0x11c   :  { %v57_v12 = vsub.f32 %v37_v1, %v55_v10  ;;  %62 = vrot.lane.b32.xlu0 %v58_v11, %s281_s7 }
 0x11e   :  { %v59_v13 = vmul.f32 %v57_v12, %v57_v12 }
 0x120   :  { %64 = vrot.lane.b32.xlu1 %v59_v13, %s281_s7 }
 0x18e   :  { %v63_v14 = vpop.permute.xlu0 %62 }
 0x18f   :  { %v68_v15 = vsel %vm46_vm0, %v63_v14, 0.0 }
 0x190   :  { %69 = vadd.xlane.f32.xlu0 %v68_v15 }
 0x192   :  { %v65_v16 = vpop.permute.xlu1 %64 }
 0x193   :  { %v71_v17 = vsel %vm46_vm0, %v65_v16, 0.0 }
 0x194   :  { %72 = vadd.xlane.f32.xlu1 %v71_v17 }
 0x1a5   :  { %105 = vrot.lane.b32.xlu1 %v204_v18, %s282_s9 }
 0x1a9   :  { %123 = vrot.lane.b32.xlu1 %v37_v1, %s282_s9 }
 0x21d   :  { %v70_v19 = vpop.xlane.xlu0 %69 }
 0x21e   :  { %v74_v20 = vmul.f32 0.0625, %v70_v19 }
 0x220   :  { %v76_v21 = vadd.f32 1e-05, %v74_v20 }
 0x221   :  { %v73_v22 = vpop.xlane.xlu1 %72 }
 0x222   :  { %226 = vrsqrt.f32 %v76_v21  ;;  %v75_v23 = vmul.f32 0.0625, %v73_v22 }
 0x224   :  { %v77_v24 = vadd.f32 1e-05, %v75_v23 }
 0x225   :  { %v106_v32 = vpop.permute.xlu1 %105 }
 0x226   :  { %228 = vrsqrt.f32 %v77_v24 }
 0x229   :  { %v124_v36 = vpop.permute.xlu1 %123 }
 0x22a   :  { %127 = vst.msk [vmem:[#allocation6] sm:$0xff] %vm126_vm2, %v124_v36 }
 0x22c   :  { %v227_v26 = vpop.eup %226 }
 0x22d   :  { %v87_v27 = vmul.f32 %v227_v26, %v203_v25 }
 0x22f   :  { %91 = vrot.lane.b32.xlu0 %v87_v27, %s282_s9 }
 0x230   :  { %v229_v28 = vpop.eup %228 }
 0x231   :  { %v88_v29 = vmul.f32 %v229_v28, %v203_v25  ;;  %v184_v49 = vld [vmem:[#allocation6] sm:$0xff] }
 0x233   :  { %93 = vrot.lane.b32.xlu0 %v88_v29, %s282_s9 }
 0x2a1   :  { %v92_v31 = vpop.permute.xlu0 %91 }
 0x2a2   :  { %v97_v33 = vmul.f32 %v92_v31, %v56_v8 }
 0x2a4   :  { %v108_v34 = vadd.f32 %v106_v32, %v97_v33 }
 0x2a5   :  { %v94_v39 = vpop.permute.xlu0 %93 }
 0x2a6   :  { %v207_v35 = vpack.c.bf16 %v108_v34, %v108_v34  ;;  %v98_v40 = vmul.f32 %v94_v39, %v57_v12 }
 0x2a8   :  { %114 = vrot.lane.b32.xlu0 %v207_v35, %s281_s7  ;;  %v109_v41 = vadd.f32 %v106_v32, %v98_v40 }
 0x2aa   :  { %v120_v42 = vpack.c.bf16 %v109_v41, %v109_v41 }
 0x2ac   :  { %133 = vperm.xlu0 %225, %v130_v38  }
 0x31a   :  { %v115_v43 = vpop.permute.xlu0 %114 }
 0x31b   :  { %118 = vst.msk [vmem:[#allocation2] sm:$0xf] %vm117_vm3, %v115_v43 }
 0x31c   :  { %122 = vst.msk [vmem:[#allocation2] sm:$0xf] %vm121_vm4, %v120_v42 }
 0x323   :  { %v129_v44 = vld [vmem:[#allocation2] sm:$0xf] }
 0x324   :  { %v142_v45 = vsel %vm140_vm5, %v129_v44, 0 }
 0x325   :  { %211 = vmatpush3.bf16.msra.mxu0 %v142_v45 }
 0x328   :  { %213 = vmatmul.mubr.msk.bf16.vlgmr.msra.gmra.mrb[0].mxu0 %vm136_vm6, %v128_v46 }
 0x32b   :  { %v134_v47 = vpop.permute.xlu0 %133 }
 0x3fb   :  { %v178_v48 = vpop.f32.mrb[0].mxu0 }
 0x3fc   :  { %v179_v50 = vadd.f32 %v178_v48, %v134_v47  ;;  %v214_v51 = vpop.f32.mrb[1].mxu0 }
 0x3fd   :  { %v181_v52 = vpop.f32.mrb[2].mxu0 }
 0x3fe   :  { %v185_v53 = vmul.f32 %v184_v49, %v179_v50  ;;  %v215_v54 = vpop.f32.mrb[3].mxu0 }
 0x400   :  { %187 = vst.msk [vmem:[#allocation6] sm:$0xff] %vm186_vm7, %v185_v53 }
 0x401   :  { %263 = shalt.err (!%p260_p12)
}
 0x402   :  { %s264_s17 = scalar_lea.hbm %s368_s5, 128 }
 0x403   :  { %p265_p13 = scmp.ne.s32.totalorder %s368_s5, %s264_s17  ;;  %p268_p0 = scmp.lt.u32.totalorder %s264_s17, %s368_s5 }
 0x405   :  { %p270_p1 = pnand %p268_p0, %p265_p13 }
 0x407   :  { %273 = shalt.err (!%p270_p1)
}
 0x408   :  { %197 = dma.vmem_to_hbm [thread:$0]  %s195_s14, 128, %s368_s5, [#allocation5]  }
 0x409   :  { %276 = dma.done.wait [#allocation5], 128  }
 0x40a   :  { %277 = vsyncadd [#allocation5], 4294967168 }
 0x40b   :  { %201 = vsyncpa [#allocation4], 1 }
 0x40c   :  { %202 = vsyncpa [#allocation5], 1 }

</bundles_post_ra>
